<compile_context>
chip_gen: v5e
topology: v5e:2x2
jax: 0.10.0
libtpu: 0.0.40
codegen_flags: <defaults>
</compile_context>

<pallas_src>
import functools

import jax
import jax.numpy as jnp
from jax.experimental import pallas as pl
from jax.experimental.pallas import tpu as pltpu

H1, H2 = 100, 500
_BN_EPS = 1e-5
_MAX_TILE_B = 1024   # batch tile cap (multiple of 8)
_SPLIT_B = 64        # above this padded batch, force >= 2 grid steps (v7x 2 TCs)


def _round_up(n, m):
    return ((n + m - 1) // m) * m


def _pad_to(x, shape):
    pads = [(0, s - d) for s, d in zip(shape, x.shape)]
    return jnp.pad(x, pads)


# ----------------------------- Pallas kernel --------------------------------
def _policy_kernel(x_ref, w1_ref, b1_ref, w2_ref, b2_ref, w3_ref, b3_ref,
                   wh_ref, bh_ref, out_ref, *, ap):
    def leaky(v):
        # LeakyReLU(0.1): max(v, 0.1*v) is exact for slope in (0, 1).
        return jnp.maximum(v, 0.1 * v)

    # fc1/fc2/fc3 (+LeakyReLU); eval-mode BN is pre-folded into the next layer.
    h = leaky(jnp.dot(x_ref[...], w1_ref[...],
                      preferred_element_type=jnp.float32) + b1_ref[...])
    h = leaky(jnp.dot(h, w2_ref[...],
                      preferred_element_type=jnp.float32) + b2_ref[...])
    h = leaky(jnp.dot(h, w3_ref[...],
                      preferred_element_type=jnp.float32) + b3_ref[...])

    # fused heads: lanes [0, ap) = mean-head, lanes [ap, 2*ap) = log_std-head
    heads = jnp.dot(h, wh_ref[...],
                    preferred_element_type=jnp.float32) + bh_ref[...]

    # Direct, 128-lane-aligned sub-block stores (no concatenate temporary).
    out_ref[:, :ap] = jnp.tanh(heads[:, :ap])
    out_ref[:, ap:] = jnp.clip(heads[:, ap:], -20.0, 2.0)


# ------------------------------ param init ----------------------------------
def make_policynet_params(state_dim, action_dim, key):
    """Deterministic parameter init matching the PyTorch __init__."""
    keys = jax.random.split(key, 10)

    def linear(kw, kb, fan_in, fan_out, w_bound):
        # weights overwritten with uniform(-0.001, 0.001) in the PyTorch code;
        # biases keep PyTorch default uniform(-1/sqrt(fan_in), 1/sqrt(fan_in)).
        w = jax.random.uniform(kw, (fan_in, fan_out), jnp.float32, -w_bound, w_bound)
        bb = 1.0 / jnp.sqrt(jnp.float32(fan_in))
        b = jax.random.uniform(kb, (fan_out,), jnp.float32, -bb, bb)
        return w, b

    p = {}
    p["w1"], p["b1"] = linear(keys[0], keys[1], state_dim, H1, 0.001)
    p["w2"], p["b2"] = linear(keys[2], keys[3], H1, H2, 0.001)
    p["w3"], p["b3"] = linear(keys[4], keys[5], H2, H1, 0.001)
    p["wm"], p["bm"] = linear(keys[6], keys[7], H1, action_dim, 0.001)
    p["wl"], p["bl"] = linear(keys[8], keys[9], H1, action_dim, 0.001)

    # BatchNorm1d params / running stats at init (eval-mode folding):
    for name, dim in (("bn1", H1), ("bn2", H2), ("bn3", H1)):
        gamma = jnp.ones((dim,), jnp.float32)
        beta = jnp.zeros((dim,), jnp.float32)
        run_mean = jnp.zeros((dim,), jnp.float32)
        run_var = jnp.ones((dim,), jnp.float32)
        scale = gamma / jnp.sqrt(run_var + _BN_EPS)
        shift = beta - run_mean * scale
        p[name + "_scale"] = scale
        p[name + "_shift"] = shift
    return p


def prepare_policynet_params(params, state_dim, action_dim):
    """One-time prep: fold eval-mode BN into the following Linear layers,
    pad everything to (8,128)-aligned shapes, and pack the two heads into a
    single weight.  Do this OUTSIDE the per-step forward path."""
    Sp = _round_up(state_dim, 128)
    H1p = _round_up(H1, 128)
    H2p = _round_up(H2, 128)
    Ap = _round_up(action_dim, 128)

    s1, t1 = params["bn1_scale"], params["bn1_shift"]
    s2, t2 = params["bn2_scale"], params["bn2_shift"]
    s3, t3 = params["bn3_scale"], params["bn3_shift"]

    # y = (h * s + t) @ W + b  ==  h @ (diag(s) @ W) + (b + t @ W)   (exact)
    w2f = s1[:, None] * params["w2"]
    b2f = params["b2"] + t1 @ params["w2"]
    w3f = s2[:, None] * params["w3"]
    b3f = params["b3"] + t2 @ params["w3"]
    wmf = s3[:, None] * params["wm"]
    bmf = params["bm"] + t3 @ params["wm"]
    wlf = s3[:, None] * params["wl"]
    blf = params["bl"] + t3 @ params["wl"]

    wh = jnp.concatenate([_pad_to(wmf, (H1p, Ap)), _pad_to(wlf, (H1p, Ap))], axis=1)
    bh = jnp.concatenate([_pad_to(bmf.reshape(1, -1), (1, Ap)),
                          _pad_to(blf.reshape(1, -1), (1, Ap))], axis=1)

    prepared = (
        _pad_to(params["w1"], (Sp, H1p)),
        _pad_to(params["b1"].reshape(1, -1), (1, H1p)),
        _pad_to(w2f, (H1p, H2p)),
        _pad_to(b2f.reshape(1, -1), (1, H2p)),
        _pad_to(w3f, (H2p, H1p)),
        _pad_to(b3f.reshape(1, -1), (1, H1p)),
        wh,
        bh,
    )
    return jax.tree_util.tree_map(jnp.asarray, prepared)


# ------------------------------- wrapper -------------------------------------
@functools.partial(jax.jit, static_argnames=("state_dim", "action_dim"))
def policynet_forward(state, prepared, *, state_dim, action_dim):
    """Returns (mean, std, log_std) — the parameters of Normal(mean, std)."""
    B = state.shape[0]
    Sp = _round_up(state_dim, 128)
    H1p = _round_up(H1, 128)
    H2p = _round_up(H2, 128)
    Ap = _round_up(action_dim, 128)

    # Batch tiling: tiny batches use a single step (launch-bound regime);
    # larger batches are split into >= 2 "parallel" grid steps so v7x's two
    # TensorCores both get work, with the tile capped at _MAX_TILE_B which
    # keeps per-step VMEM well under the 16 MiB v5e default scoped limit.
    Bp = _round_up(max(B, 8), 8)
    if Bp <= _SPLIT_B:
        tile_b = Bp
    else:
        tile_b = min(_MAX_TILE_B, _round_up(pl.cdiv(Bp, 2), 8))
        Bp = _round_up(Bp, tile_b)
    grid = (Bp // tile_b,)

    x_p = _pad_to(state.astype(jnp.float32), (Bp, Sp))
    w1p, b1p, w2p, b2p, w3p, b3p, whp, bhp = prepared

    def resident(shape):
        # parameter keeps the same VMEM block for every grid step
        return pl.BlockSpec(shape, lambda i: (0, 0))

    out = pl.pallas_call(
        functools.partial(_policy_kernel, ap=Ap),
        out_shape=jax.ShapeDtypeStruct((Bp, 2 * Ap), jnp.float32),
        grid=grid,
        in_specs=[
            pl.BlockSpec((tile_b, Sp), lambda i: (i, 0)),   # state, batch-tiled
            resident((Sp, H1p)), resident((1, H1p)),
            resident((H1p, H2p)), resident((1, H2p)),
            resident((H2p, H1p)), resident((1, H1p)),
            resident((H1p, 2 * Ap)), resident((1, 2 * Ap)),
        ],
        out_specs=pl.BlockSpec((tile_b, 2 * Ap), lambda i: (i, 0)),
        compiler_params=pltpu.CompilerParams(
            dimension_semantics=("parallel",),
        ),
    )(x_p, w1p, b1p, w2p, b2p, w3p, b3p, whp, bhp)

    # std = exp(log_std) computed here: fuses with the output slices under jit,
    # so the kernel only writes the narrower [mean | log_std] slab.
    mean = out[:B, :action_dim]
    log_std = out[:B, Ap:Ap + action_dim]
    std = jnp.exp(log_std)
    return mean, std, log_std


# ------------------------------ reference ------------------------------------
def _reference_forward(state, params):
    def leaky(v):
        return jnp.where(v >= 0, v, 0.1 * v)

    h = leaky(state @ params["w1"] + params["b1"])
    h = h * params["bn1_scale"] + params["bn1_shift"]
    h = leaky(h @ params["w2"] + params["b2"])
    h = h * params["bn2_scale"] + params["bn2_shift"]
    h = leaky(h @ params["w3"] + params["b3"])
    h = h * params["bn3_scale"] + params["bn3_shift"]
    mean = jnp.tanh(h @ params["wm"] + params["bm"])
    log_std = jnp.clip(h @ params["wl"] + params["bl"], -20.0, 2.0)
    return mean, jnp.exp(log_std), log_std


# --------------------------------- main ---------------------------------------
if __name__ == "__main__":
    state_dim = 16
    action_dim = 4
    batch = 2

    key = jax.random.PRNGKey(0)
    k_params, k_state = jax.random.split(key)

    params = make_policynet_params(state_dim, action_dim, k_params)
    prepared = prepare_policynet_params(params, state_dim, action_dim)
    state = jax.random.normal(k_state, (batch, state_dim), dtype=jnp.float32)

    mean, std, log_std = policynet_forward(
        state, prepared, state_dim=state_dim, action_dim=action_dim
    )
    jax.block_until_ready((mean, std, log_std))

    ref_mean, ref_std, ref_logstd = _reference_forward(state, params)
    assert mean.shape == (batch, action_dim)
    assert std.shape == (batch, action_dim)
    assert log_std.shape == (batch, action_dim)
    assert jnp.allclose(mean, ref_mean, atol=1e-5, rtol=1e-5)
    assert jnp.allclose(std, ref_std, atol=1e-5, rtol=1e-5)
    assert jnp.allclose(log_std, ref_logstd, atol=1e-5, rtol=1e-5)

    # Also exercise a multi-tile batch (grid > 1) to validate the tiled path.
    big_state = jax.random.normal(jax.random.PRNGKey(2), (300, state_dim), jnp.float32)
    bm, bs, bl = policynet_forward(
        big_state, prepared, state_dim=state_dim, action_dim=action_dim
    )
    jax.block_until_ready((bm, bs, bl))
    rm, rs, rl = _reference_forward(big_state, params)
    assert jnp.allclose(bm, rm, atol=1e-5, rtol=1e-5)
    assert jnp.allclose(bs, rs, atol=1e-5, rtol=1e-5)
    assert jnp.allclose(bl, rl, atol=1e-5, rtol=1e-5)

    # Normal(mean, std) distribution object itself is returned as its parameters.
    print("KERNEL_OK")
</pallas_src>

<mosaic_0001>
module attributes {stable_mosaic.version = 11 : i64} {
  func.func @_policy_kernel(%arg0: i32, %arg1: memref<8x128xf32, #tpu.memory_space<vmem>>, %arg2: memref<128x128xf32, #tpu.memory_space<vmem>>, %arg3: memref<1x128xf32, #tpu.memory_space<vmem>>, %arg4: memref<128x512xf32, #tpu.memory_space<vmem>>, %arg5: memref<1x512xf32, #tpu.memory_space<vmem>>, %arg6: memref<512x128xf32, #tpu.memory_space<vmem>>, %arg7: memref<1x128xf32, #tpu.memory_space<vmem>>, %arg8: memref<128x256xf32, #tpu.memory_space<vmem>>, %arg9: memref<1x256xf32, #tpu.memory_space<vmem>>, %arg10: memref<8x256xf32, #tpu.memory_space<vmem>>) attributes {dimension_semantics = [#tpu.dimension_semantics<parallel>], iteration_bounds = array<i64: 1>, scalar_prefetch = 0 : i64, scratch_operands = 0 : i64, tpu.core_type = #tpu.core_type<tc>, window_params = [{transform_indices = @transform_0, window_bounds = array<i64: 8, 128>}, {pipeline_mode = #tpu.pipeline_mode<synchronous>, transform_indices = @transform_1, window_bounds = array<i64: 128, 128>}, {pipeline_mode = #tpu.pipeline_mode<synchronous>, transform_indices = @transform_2, window_bounds = array<i64: 1, 128>}, {pipeline_mode = #tpu.pipeline_mode<synchronous>, transform_indices = @transform_3, window_bounds = array<i64: 128, 512>}, {pipeline_mode = #tpu.pipeline_mode<synchronous>, transform_indices = @transform_4, window_bounds = array<i64: 1, 512>}, {pipeline_mode = #tpu.pipeline_mode<synchronous>, transform_indices = @transform_5, window_bounds = array<i64: 512, 128>}, {pipeline_mode = #tpu.pipeline_mode<synchronous>, transform_indices = @transform_6, window_bounds = array<i64: 1, 128>}, {pipeline_mode = #tpu.pipeline_mode<synchronous>, transform_indices = @transform_7, window_bounds = array<i64: 128, 256>}, {pipeline_mode = #tpu.pipeline_mode<synchronous>, transform_indices = @transform_8, window_bounds = array<i64: 1, 256>}, {transform_indices = @transform_9, window_bounds = array<i64: 8, 256>}]} {
    %c0 = arith.constant 0 : index
    %c0_0 = arith.constant 0 : index
    %0 = vector.load %arg1[%c0, %c0_0] : memref<8x128xf32, #tpu.memory_space<vmem>>, vector<8x128xf32>
    %c0_1 = arith.constant 0 : index
    %c0_2 = arith.constant 0 : index
    %1 = vector.load %arg2[%c0_1, %c0_2] : memref<128x128xf32, #tpu.memory_space<vmem>>, vector<128x128xf32>
    %cst = arith.constant dense<0.000000e+00> : vector<8x128xf32>
    %2 = tpu.matmul %0, %1, %cst {dimension_numbers = #tpu.dot_dimension_numbers<[1], [0], [0], [1], [0, 0, 1, 1], [], []>} : vector<8x128xf32>, vector<128x128xf32>, vector<8x128xf32> -> vector<8x128xf32>
    %c0_3 = arith.constant 0 : index
    %c0_4 = arith.constant 0 : index
    %3 = vector.load %arg3[%c0_3, %c0_4] : memref<1x128xf32, #tpu.memory_space<vmem>>, vector<1x128xf32>
    %4 = vector.broadcast %3 : vector<1x128xf32> to vector<8x128xf32>
    %5 = arith.addf %2, %4 : vector<8x128xf32>
    %cst_5 = arith.constant 1.000000e-01 : f32
    %6 = vector.broadcast %cst_5 : f32 to vector<8x128xf32>
    %7 = arith.mulf %6, %5 : vector<8x128xf32>
    %8 = arith.maximumf %5, %7 : vector<8x128xf32>
    %c0_6 = arith.constant 0 : index
    %c0_7 = arith.constant 0 : index
    %9 = vector.load %arg4[%c0_6, %c0_7] : memref<128x512xf32, #tpu.memory_space<vmem>>, vector<128x512xf32>
    %cst_8 = arith.constant dense<0.000000e+00> : vector<8x512xf32>
    %10 = tpu.matmul %8, %9, %cst_8 {dimension_numbers = #tpu.dot_dimension_numbers<[1], [0], [0], [1], [0, 0, 1, 1], [], []>} : vector<8x128xf32>, vector<128x512xf32>, vector<8x512xf32> -> vector<8x512xf32>
    %c0_9 = arith.constant 0 : index
    %c0_10 = arith.constant 0 : index
    %11 = vector.load %arg5[%c0_9, %c0_10] : memref<1x512xf32, #tpu.memory_space<vmem>>, vector<1x512xf32>
    %12 = vector.broadcast %11 : vector<1x512xf32> to vector<8x512xf32>
    %13 = arith.addf %10, %12 : vector<8x512xf32>
    %cst_11 = arith.constant 1.000000e-01 : f32
    %14 = vector.broadcast %cst_11 : f32 to vector<8x512xf32>
    %15 = arith.mulf %14, %13 : vector<8x512xf32>
    %16 = arith.maximumf %13, %15 : vector<8x512xf32>
    %c0_12 = arith.constant 0 : index
    %c0_13 = arith.constant 0 : index
    %17 = vector.load %arg6[%c0_12, %c0_13] : memref<512x128xf32, #tpu.memory_space<vmem>>, vector<512x128xf32>
    %cst_14 = arith.constant dense<0.000000e+00> : vector<8x128xf32>
    %18 = tpu.matmul %16, %17, %cst_14 {dimension_numbers = #tpu.dot_dimension_numbers<[1], [0], [0], [1], [0, 0, 1, 1], [], []>} : vector<8x512xf32>, vector<512x128xf32>, vector<8x128xf32> -> vector<8x128xf32>
    %c0_15 = arith.constant 0 : index
    %c0_16 = arith.constant 0 : index
    %19 = vector.load %arg7[%c0_15, %c0_16] : memref<1x128xf32, #tpu.memory_space<vmem>>, vector<1x128xf32>
    %20 = vector.broadcast %19 : vector<1x128xf32> to vector<8x128xf32>
    %21 = arith.addf %18, %20 : vector<8x128xf32>
    %cst_17 = arith.constant 1.000000e-01 : f32
    %22 = vector.broadcast %cst_17 : f32 to vector<8x128xf32>
    %23 = arith.mulf %22, %21 : vector<8x128xf32>
    %24 = arith.maximumf %21, %23 : vector<8x128xf32>
    %c0_18 = arith.constant 0 : index
    %c0_19 = arith.constant 0 : index
    %25 = vector.load %arg8[%c0_18, %c0_19] : memref<128x256xf32, #tpu.memory_space<vmem>>, vector<128x256xf32>
    %cst_20 = arith.constant dense<0.000000e+00> : vector<8x256xf32>
    %26 = tpu.matmul %24, %25, %cst_20 {dimension_numbers = #tpu.dot_dimension_numbers<[1], [0], [0], [1], [0, 0, 1, 1], [], []>} : vector<8x128xf32>, vector<128x256xf32>, vector<8x256xf32> -> vector<8x256xf32>
    %c0_21 = arith.constant 0 : index
    %c0_22 = arith.constant 0 : index
    %27 = vector.load %arg9[%c0_21, %c0_22] : memref<1x256xf32, #tpu.memory_space<vmem>>, vector<1x256xf32>
    %28 = vector.broadcast %27 : vector<1x256xf32> to vector<8x256xf32>
    %29 = arith.addf %26, %28 : vector<8x256xf32>
    %30 = vector.extract_strided_slice %29 {offsets = [0, 0], sizes = [8, 128], strides = [1, 1]} : vector<8x256xf32> to vector<8x128xf32>
    %31 = math.tanh %30 : vector<8x128xf32>
    %c0_23 = arith.constant 0 : index
    %c0_24 = arith.constant 0 : index
    %32 = vector.load %arg10[%c0_23, %c0_24] : memref<8x256xf32, #tpu.memory_space<vmem>>, vector<8x128xf32>
    tpu.vector_store %arg10[%c0_23, %c0_24], %31 {strides = array<i32>} : memref<8x256xf32, #tpu.memory_space<vmem>>, vector<8x128xf32>,
    %33 = vector.extract_strided_slice %29 {offsets = [0, 128], sizes = [8, 128], strides = [1, 1]} : vector<8x256xf32> to vector<8x128xf32>
    %cst_25 = arith.constant -2.000000e+01 : f32
    %cst_26 = arith.constant 2.000000e+00 : f32
    %34 = vector.broadcast %cst_25 : f32 to vector<8x128xf32>
    %35 = arith.maximumf %34, %33 : vector<8x128xf32>
    %36 = vector.broadcast %cst_26 : f32 to vector<8x128xf32>
    %37 = arith.minimumf %36, %35 : vector<8x128xf32>
    %c0_27 = arith.constant 0 : index
    %c128 = arith.constant 128 : index
    %38 = vector.load %arg10[%c0_27, %c128] : memref<8x256xf32, #tpu.memory_space<vmem>>, vector<8x128xf32>
    tpu.vector_store %arg10[%c0_27, %c128], %37 {strides = array<i32>} : memref<8x256xf32, #tpu.memory_space<vmem>>, vector<8x128xf32>,
    return
  }
  func.func @transform_0(%arg0: i32) -> (i32, i32) {
    %c0_i32 = arith.constant 0 : i32
    %c0_i32_0 = arith.constant 0 : i32
    return %arg0, %c0_i32 : i32, i32
  }
  func.func @transform_1(%arg0: i32) -> (i32, i32) {
    %c0_i32 = arith.constant 0 : i32
    %c0_i32_0 = arith.constant 0 : i32
    %c0_i32_1 = arith.constant 0 : i32
    return %c0_i32, %c0_i32_0 : i32, i32
  }
  func.func @transform_2(%arg0: i32) -> (i32, i32) {
    %c0_i32 = arith.constant 0 : i32
    %c0_i32_0 = arith.constant 0 : i32
    %c0_i32_1 = arith.constant 0 : i32
    return %c0_i32, %c0_i32_0 : i32, i32
  }
  func.func @transform_3(%arg0: i32) -> (i32, i32) {
    %c0_i32 = arith.constant 0 : i32
    %c0_i32_0 = arith.constant 0 : i32
    %c0_i32_1 = arith.constant 0 : i32
    return %c0_i32, %c0_i32_0 : i32, i32
  }
  func.func @transform_4(%arg0: i32) -> (i32, i32) {
    %c0_i32 = arith.constant 0 : i32
    %c0_i32_0 = arith.constant 0 : i32
    %c0_i32_1 = arith.constant 0 : i32
    return %c0_i32, %c0_i32_0 : i32, i32
  }
  func.func @transform_5(%arg0: i32) -> (i32, i32) {
    %c0_i32 = arith.constant 0 : i32
    %c0_i32_0 = arith.constant 0 : i32
    %c0_i32_1 = arith.constant 0 : i32
    return %c0_i32, %c0_i32_0 : i32, i32
  }
  func.func @transform_6(%arg0: i32) -> (i32, i32) {
    %c0_i32 = arith.constant 0 : i32
    %c0_i32_0 = arith.constant 0 : i32
    %c0_i32_1 = arith.constant 0 : i32
    return %c0_i32, %c0_i32_0 : i32, i32
  }
  func.func @transform_7(%arg0: i32) -> (i32, i32) {
    %c0_i32 = arith.constant 0 : i32
    %c0_i32_0 = arith.constant 0 : i32
    %c0_i32_1 = arith.constant 0 : i32
    return %c0_i32, %c0_i32_0 : i32, i32
  }
  func.func @transform_8(%arg0: i32) -> (i32, i32) {
    %c0_i32 = arith.constant 0 : i32
    %c0_i32_0 = arith.constant 0 : i32
    %c0_i32_1 = arith.constant 0 : i32
    return %c0_i32, %c0_i32_0 : i32, i32
  }
  func.func @transform_9(%arg0: i32) -> (i32, i32) {
    %c0_i32 = arith.constant 0 : i32
    %c0_i32_0 = arith.constant 0 : i32
    return %arg0, %c0_i32 : i32, i32
  }
}

</mosaic_0001>

<bundles_post_ra>
// kernel: policynet_forward.1
= control target key start
LH: loop header
LB: loop body
LE: loop exit
PB: predicated region body
PF: predicated region fallthrough
CT: control target
= control target key end

     0   :  { %14 = vsyncpa [#allocation3], 0  ;;  %s749_s0 = inlined_call_operand.vmem [shape: f32[8,128], index: 0, kind: input, shape index: {}]   ;;  %s750_s1 = inlined_call_operand.hbm [shape: f32[128,128], index: 1, kind: input, shape index: {}]   ;;  %s751_s2 = inlined_call_operand.vmem [shape: f32[1,128], index: 2, kind: input, shape index: {}]   ;;  %s752_s3 = inlined_call_operand.hbm [shape: f32[128,512], index: 3, kind: input, shape index: {}]   ;;  %s753_s4 = inlined_call_operand.vmem [shape: f32[1,512], index: 4, kind: input, shape index: {}]   ;;  %s754_s5 = inlined_call_operand.hbm [shape: f32[512,128], index: 5, kind: input, shape index: {}]   ;;  %s755_s6 = inlined_call_operand.vmem [shape: f32[1,128], index: 6, kind: input, shape index: {}]   ;;  %s756_s7 = inlined_call_operand.hbm [shape: f32[128,256], index: 7, kind: input, shape index: {}]   ;;  %s757_s8 = inlined_call_operand.vmem [shape: f32[1,256], index: 8, kind: input, shape index: {}]   ;;  %s758_s9 = inlined_call_operand.vmem [shape: f32[8,256], index: 9, kind: output, shape index: {}]  }
   0x1   :  { %15 = vsyncpa [#allocation5], 0  ;;  %s38_s11 = sshll.u32 %s752_s3, 4  ;;  %s39_s11 = int_to_ptr.hbm [resolvable:$true] %s38_s11 }
   0x2   :  { %16 = vsyncpa [#allocation8], 0  ;;  %s656_s12 = smov [#allocation4]   ;;  %s23_s16 = sshll.u32 %s750_s1, 4  ;;  %s24_s16 = int_to_ptr.hbm [resolvable:$true] %s23_s16 }
   0x3   :  { %s40_s13 = sshll.u32 %s656_s12, 4  ;;  %s657_s17 = smov 512   ;;  %s41_s13 = int_to_ptr.vmem [resolvable:$true] %s40_s13 }
   0x4   :  { %s658_s18 = smov 32   ;;  %s659_s19 = smov [#allocation2]  }
   0x5   :  { %46 = dma.hbm_to_vmem [thread:$0]  %s39_s11, 8192, %s41_s13, [#allocation5], %s657_s17, %s657_s17, %s658_s18  }
   0x6   :  { %s25_s20 = sshll.u32 %s659_s19, 4  ;;  %s660_s21 = smov 128   ;;  %s26_s20 = int_to_ptr.vmem [resolvable:$true] %s25_s20 }
   0x7   :  { %s661_s22 = smov 8   ;;  %s53_s24 = sshll.u32 %s754_s5, 4  ;;  %s54_s24 = int_to_ptr.hbm [resolvable:$true] %s53_s24 }
   0x8   :  { %31 = dma.hbm_to_vmem [thread:$0]  %s24_s16, 2048, %s26_s20, [#allocation3], %s660_s21, %s660_s21, %s661_s22  }
   0x9   :  { %s662_s25 = smov [#allocation6]   ;;  %s68_s28 = sshll.u32 %s756_s7, 4  ;;  %s69_s28 = int_to_ptr.hbm [resolvable:$true] %s68_s28 }
   0xa   :  { %s55_s26 = sshll.u32 %s662_s25, 4  ;;  %s663_s29 = smov [#allocation7]   ;;  %s56_s26 = int_to_ptr.vmem [resolvable:$true] %s55_s26 }
   0xb   :  { %61 = dma.hbm_to_vmem [thread:$0]  %s54_s24, 8192, %s56_s26, [#allocation5], %s660_s21, %s660_s21, %s661_s22  }
   0xc   :  { %s70_s30 = sshll.u32 %s663_s29, 4  ;;  %s664_s10 = smov 256   ;;  %s71_s30 = int_to_ptr.vmem [resolvable:$true] %s70_s30 }
   0xd   :  { %s665_s11 = smov 16  }
   0xe   :  { %76 = dma.hbm_to_vmem [thread:$0]  %s69_s28, 4096, %s71_s30, [#allocation8], %s664_s10, %s664_s10, %s665_s11  }
   0xf   :  { %650 = dma.done.wait [#allocation3], 2048  }
  0x10   :  { %651 = vsyncadd [#allocation3], 4294965248 }
  0x11   :  { %652 = dma.done.wait [#allocation5], 16384  }
  0x12   :  { %653 = vsyncadd [#allocation5], 4294950912 }
  0x13   :  { %654 = dma.done.wait [#allocation8], 4096  }
  0x14   :  { %655 = vsyncadd [#allocation8], 4294963200  ;;  %v111_v0 = vld [vmem:[#allocation2 + $0x78] sm:$0xff]  ;;  %v110_v1 = vld [vmem:[#allocation2 + $0x70] sm:$0xff] }
  0x15   :  { %116 = vmatpush.msra.mxu0 %v111_v0  ;;  %v109_v2 = vld [vmem:[#allocation2 + $0x68] sm:$0xff]  ;;  %v108_v3 = vld [vmem:[#allocation2 + $0x60] sm:$0xff]  ;;  %v107_v5 = vld [vmem:[#allocation2 + $0x58] sm:$0xff] }
  0x16   :  { %v198_v4 = vld [vmem:[#allocation4 + $0x1e0] sm:$0xff]  ;;  %v199_v6 = vld [vmem:[#allocation4 + $0x1e8] sm:$0xff]  ;;  %v200_v7 = vld [vmem:[#allocation4 + $0x1f0] sm:$0xff] }
  0x17   :  { %117 = vmatpush.msra.mxu0 %v110_v1  ;;  %212 = vmatpush.msra.mxu1 %v198_v4  ;;  %v194_v8 = vld [vmem:[#allocation4 + $0x1c0] sm:$0xff]  ;;  %v195_v9 = vld [vmem:[#allocation4 + $0x1c8] sm:$0xff]  ;;  %v196_v10 = vld [vmem:[#allocation4 + $0x1d0] sm:$0xff] }
  0x18   :  { %232 = vmatpush.msra.mxu2 %v199_v6  ;;  %v106_v11 = vld [vmem:[#allocation2 + $0x50] sm:$0xff]  ;;  %252 = vmatpush.msra.mxu3 %v200_v7  ;;  %v190_v12 = vld [vmem:[#allocation4 + $0x1a0] sm:$0xff]  ;;  %v191_v13 = vld [vmem:[#allocation4 + $0x1a8] sm:$0xff] }
  0x19   :  { %118 = vmatpush.msra.mxu0 %v109_v2  ;;  %213 = vmatpush.msra.mxu1 %v194_v8  ;;  %v192_v14 = vld [vmem:[#allocation4 + $0x1b0] sm:$0xff]  ;;  %v186_v15 = vld [vmem:[#allocation4 + $0x180] sm:$0xff]  ;;  %v105_v16 = vld [vmem:[#allocation2 + $0x48] sm:$0xff] }
  0x1a   :  { %233 = vmatpush.msra.mxu2 %v195_v9  ;;  %253 = vmatpush.msra.mxu3 %v196_v10  ;;  %v187_v17 = vld [vmem:[#allocation4 + $0x188] sm:$0xff]  ;;  %v188_v18 = vld [vmem:[#allocation4 + $0x190] sm:$0xff]  ;;  %v182_v19 = vld [vmem:[#allocation4 + $0x160] sm:$0xff] }
  0x1b   :  { %119 = vmatpush.msra.mxu0 %v108_v3  ;;  %214 = vmatpush.msra.mxu1 %v190_v12  ;;  %v104_v20 = vld [vmem:[#allocation2 + $0x40] sm:$0xff]  ;;  %v183_v21 = vld [vmem:[#allocation4 + $0x168] sm:$0xff]  ;;  %v184_v22 = vld [vmem:[#allocation4 + $0x170] sm:$0xff] }
  0x1c   :  { %234 = vmatpush.msra.mxu2 %v191_v13  ;;  %254 = vmatpush.msra.mxu3 %v192_v14  ;;  %v178_v23 = vld [vmem:[#allocation4 + $0x140] sm:$0xff]  ;;  %v103_v24 = vld [vmem:[#allocation2 + $0x38] sm:$0xff]  ;;  %v179_v25 = vld [vmem:[#allocation4 + $0x148] sm:$0xff] }
  0x1d   :  { %120 = vmatpush.msra.mxu0 %v107_v5  ;;  %215 = vmatpush.msra.mxu1 %v186_v15  ;;  %v180_v26 = vld [vmem:[#allocation4 + $0x150] sm:$0xff]  ;;  %v174_v27 = vld [vmem:[#allocation4 + $0x120] sm:$0xff]  ;;  %v175_v29 = vld [vmem:[#allocation4 + $0x128] sm:$0xff] }
  0x1e   :  { %235 = vmatpush.msra.mxu2 %v187_v17  ;;  %255 = vmatpush.msra.mxu3 %v188_v18  ;;  %v102_v28 = vld [vmem:[#allocation2 + $0x30] sm:$0xff]  ;;  %v170_v31 = vld [vmem:[#allocation4 + $0x100] sm:$0xff]  ;;  %v101_v32 = vld [vmem:[#allocation2 + $0x28] sm:$0xff] }
  0x1f   :  { %121 = vmatpush.msra.mxu0 %v106_v11  ;;  %216 = vmatpush.msra.mxu1 %v182_v19  ;;  %v176_v30 = vld [vmem:[#allocation4 + $0x130] sm:$0xff]  ;;  %v171_v33 = vld [vmem:[#allocation4 + $0x108] sm:$0xff]  ;;  %v100_v34 = vld [vmem:[#allocation2 + $0x20] sm:$0xff] }
  0x20   :  { %236 = vmatpush.msra.mxu2 %v183_v21  ;;  %256 = vmatpush.msra.mxu3 %v184_v22  ;;  %v172_v35 = vld [vmem:[#allocation4 + $0x110] sm:$0xff]  ;;  %v166_v36 = vld [vmem:[#allocation4 + $0xe0] sm:$0xff]  ;;  %v167_v37 = vld [vmem:[#allocation4 + $0xe8] sm:$0xff] }
  0x21   :  { %122 = vmatpush.msra.mxu0 %v105_v16  ;;  %217 = vmatpush.msra.mxu1 %v178_v23  ;;  %v168_v38 = vld [vmem:[#allocation4 + $0xf0] sm:$0xff]  ;;  %v162_v39 = vld [vmem:[#allocation4 + $0xc0] sm:$0xff]  ;;  %v99_v40 = vld [vmem:[#allocation2 + $0x18] sm:$0xff] }
  0x22   :  { %237 = vmatpush.msra.mxu2 %v179_v25  ;;  %257 = vmatpush.msra.mxu3 %v180_v26  ;;  %v163_v41 = vld [vmem:[#allocation4 + $0xc8] sm:$0xff]  ;;  %v164_v42 = vld [vmem:[#allocation4 + $0xd0] sm:$0xff]  ;;  %v158_v43 = vld [vmem:[#allocation4 + $0xa0] sm:$0xff] }
  0x23   :  { %123 = vmatpush.msra.mxu0 %v104_v20  ;;  %218 = vmatpush.msra.mxu1 %v174_v27  ;;  %v98_v44 = vld [vmem:[#allocation2 + $0x10] sm:$0xff]  ;;  %v159_v45 = vld [vmem:[#allocation4 + $0xa8] sm:$0xff]  ;;  %v154_v47 = vld [vmem:[#allocation4 + $0x80] sm:$0xff] }
  0x24   :  { %238 = vmatpush.msra.mxu2 %v175_v29  ;;  %258 = vmatpush.msra.mxu3 %v176_v30  ;;  %v160_v46 = vld [vmem:[#allocation4 + $0xb0] sm:$0xff]  ;;  %v97_v48 = vld [vmem:[#allocation2 + $0x8] sm:$0xff]  ;;  %v96_v51 = vld [vmem:[#allocation2] sm:$0xff] }
  0x25   :  { %124 = vmatpush.msra.mxu0 %v103_v24  ;;  %219 = vmatpush.msra.mxu1 %v170_v31  ;;  %v155_v49 = vld [vmem:[#allocation4 + $0x88] sm:$0xff]  ;;  %v156_v50 = vld [vmem:[#allocation4 + $0x90] sm:$0xff]  ;;  %v95_v52 = vld [vmem:[%s749_s0] sm:$0xff] }
  0x26   :  { %239 = vmatpush.msra.mxu2 %v171_v33  ;;  %259 = vmatpush.msra.mxu3 %v172_v35  ;;  %v201_v53 = vld [vmem:[#allocation4 + $0x1f8] sm:$0xff]  ;;  %v150_v1 = vld [vmem:[#allocation4 + $0x60] sm:$0xff]  ;;  %v151_v2 = vld [vmem:[#allocation4 + $0x68] sm:$0xff] }
  0x27   :  { %125 = vmatpush.msra.mxu0 %v102_v28  ;;  %220 = vmatpush.msra.mxu1 %v166_v36  ;;  %v197_v54 = vld [vmem:[#allocation4 + $0x1d8] sm:$0xff]  ;;  %v152_v3 = vld [vmem:[#allocation4 + $0x70] sm:$0xff]  ;;  %v146_v5 = vld [vmem:[#allocation4 + $0x40] sm:$0xff] }
  0x28   :  { %240 = vmatpush.msra.mxu2 %v167_v37  ;;  %260 = vmatpush.msra.mxu3 %v168_v38  ;;  %v193_v55 = vld [vmem:[#allocation4 + $0x1b8] sm:$0xff]  ;;  %v147_v6 = vld [vmem:[#allocation4 + $0x48] sm:$0xff]  ;;  %v148_v7 = vld [vmem:[#allocation4 + $0x50] sm:$0xff] }
  0x29   :  { %126 = vmatpush.msra.mxu0 %v101_v32  ;;  %221 = vmatpush.msra.mxu1 %v162_v39  ;;  %v189_v56 = vld [vmem:[#allocation4 + $0x198] sm:$0xff]  ;;  %v142_v9 = vld [vmem:[#allocation4 + $0x20] sm:$0xff]  ;;  %v143_v10 = vld [vmem:[#allocation4 + $0x28] sm:$0xff] }
  0x2a   :  { %241 = vmatpush.msra.mxu2 %v163_v41  ;;  %261 = vmatpush.msra.mxu3 %v164_v42  ;;  %v185_v57 = vld [vmem:[#allocation4 + $0x178] sm:$0xff]  ;;  %v144_v11 = vld [vmem:[#allocation4 + $0x30] sm:$0xff]  ;;  %v138_v13 = vld [vmem:[#allocation4] sm:$0xff] }
  0x2b   :  { %127 = vmatpush.msra.mxu0 %v100_v34  ;;  %222 = vmatpush.msra.mxu1 %v158_v43  ;;  %v181_v58 = vld [vmem:[#allocation4 + $0x158] sm:$0xff]  ;;  %v139_v14 = vld [vmem:[#allocation4 + $0x8] sm:$0xff]  ;;  %v140_v15 = vld [vmem:[#allocation4 + $0x10] sm:$0xff] }
  0x2c   :  { %242 = vmatpush.msra.mxu2 %v159_v45  ;;  %262 = vmatpush.msra.mxu3 %v160_v46  ;;  %v177_v59 = vld [vmem:[#allocation4 + $0x138] sm:$0xff]  ;;  %v314_v19 = vld [vmem:[#allocation6 + $0x70] sm:$0xff]  ;;  %v313_v21 = vld [vmem:[#allocation6 + $0x68] sm:$0xff] }
  0x2d   :  { %128 = vmatpush.msra.mxu0 %v99_v40  ;;  %223 = vmatpush.msra.mxu1 %v154_v47  ;;  %v173_v60 = vld [vmem:[#allocation4 + $0x118] sm:$0xff]  ;;  %v362_v20 = vld [vmem:[#allocation6 + $0x1f0] sm:$0xff]  ;;  %v361_v22 = vld [vmem:[#allocation6 + $0x1e8] sm:$0xff] }
  0x2e   :  { %243 = vmatpush.msra.mxu2 %v155_v49  ;;  %263 = vmatpush.msra.mxu3 %v156_v50  ;;  %v169_v61 = vld [vmem:[#allocation4 + $0xf8] sm:$0xff]  ;;  %v330_v25 = vld [vmem:[#allocation6 + $0xf0] sm:$0xff]  ;;  %v312_v26 = vld [vmem:[#allocation6 + $0x60] sm:$0xff] }
  0x2f   :  { %129 = vmatpush.msra.mxu0 %v98_v44  ;;  %v165_v62 = vld [vmem:[#allocation4 + $0xd8] sm:$0xff]  ;;  %224 = vmatpush.msra.mxu1 %v150_v1  ;;  %v360_v27 = vld [vmem:[#allocation6 + $0x1e0] sm:$0xff]  ;;  %v346_v28 = vld [vmem:[#allocation6 + $0x170] sm:$0xff] }
  0x30   :  { %v161_v63 = vld [vmem:[#allocation4 + $0xb8] sm:$0xff]  ;;  %244 = vmatpush.msra.mxu2 %v151_v2  ;;  %264 = vmatpush.msra.mxu3 %v152_v3  ;;  %v329_v29 = vld [vmem:[#allocation6 + $0xe8] sm:$0xff]  ;;  %v328_v33 = vld [vmem:[#allocation6 + $0xe0] sm:$0xff] }
  0x31   :  { %130 = vmatpush.msra.mxu0 %v97_v48  ;;  %v157_v0 = vld [vmem:[#allocation4 + $0x98] sm:$0xff]  ;;  %225 = vmatpush.msra.mxu1 %v146_v5  ;;  %v345_v30 = vld [vmem:[#allocation6 + $0x168] sm:$0xff]  ;;  %v344_v34 = vld [vmem:[#allocation6 + $0x160] sm:$0xff] }
  0x32   :  { %v153_v4 = vld [vmem:[#allocation4 + $0x78] sm:$0xff]  ;;  %245 = vmatpush.msra.mxu2 %v147_v6  ;;  %265 = vmatpush.msra.mxu3 %v148_v7  ;;  %v310_v35 = vld [vmem:[#allocation6 + $0x50] sm:$0xff]  ;;  %v309_v39 = vld [vmem:[#allocation6 + $0x48] sm:$0xff] }
  0x33   :  { %131 = vmatpush.msra.mxu0 %v96_v51  ;;  %v149_v8 = vld [vmem:[#allocation4 + $0x58] sm:$0xff]  ;;  %226 = vmatpush.msra.mxu1 %v142_v9  ;;  %v358_v36 = vld [vmem:[#allocation6 + $0x1d0] sm:$0xff]  ;;  %v357_v40 = vld [vmem:[#allocation6 + $0x1c8] sm:$0xff] }
  0x34   :  { %132 = vmatmul.f32.vlgmr.msra.gmra.mxu0 %v95_v52  ;;  %246 = vmatpush.msra.mxu2 %v143_v10  ;;  %v145_v12 = vld [vmem:[#allocation4 + $0x38] sm:$0xff]  ;;  %v326_v41 = vld [vmem:[#allocation6 + $0xd0] sm:$0xff]  ;;  %v308_v43 = vld [vmem:[#allocation6 + $0x40] sm:$0xff] }
  0x35   :  { %272 = vmatpush.msrb.mxu0 %v201_v53  ;;  %266 = vmatpush.msra.mxu3 %v144_v11  ;;  %v141_v16 = vld [vmem:[#allocation4 + $0x18] sm:$0xff]  ;;  %v342_v42 = vld [vmem:[#allocation6 + $0x150] sm:$0xff]  ;;  %v356_v44 = vld [vmem:[#allocation6 + $0x1c0] sm:$0xff] }
  0x36   :  { %227 = vmatpush.msra.mxu1 %v138_v13  ;;  %247 = vmatpush.msra.mxu2 %v139_v14  ;;  %v315_v17 = vld [vmem:[#allocation6 + $0x78] sm:$0xff]  ;;  %v325_v45 = vld [vmem:[#allocation6 + $0xc8] sm:$0xff]  ;;  %v324_v49 = vld [vmem:[#allocation6 + $0xc0] sm:$0xff] }
  0x37   :  { %273 = vmatpush.msrb.mxu0 %v197_v54  ;;  %267 = vmatpush.msra.mxu3 %v140_v15  ;;  %v363_v18 = vld [vmem:[#allocation6 + $0x1f8] sm:$0xff]  ;;  %v341_v46 = vld [vmem:[#allocation6 + $0x148] sm:$0xff]  ;;  %v340_v50 = vld [vmem:[#allocation6 + $0x140] sm:$0xff] }
  0x38   :  { %368 = vmatpush.msrb.mxu1 %v315_v17  ;;  %v331_v23 = vld [vmem:[#allocation6 + $0xf8] sm:$0xff]  ;;  %v306_v51 = vld [vmem:[#allocation6 + $0x30] sm:$0xff]  ;;  %v321_v5 = vld [vmem:[#allocation6 + $0xa8] sm:$0xff] }
  0x39   :  { %274 = vmatpush.msrb.mxu0 %v193_v55  ;;  %v347_v24 = vld [vmem:[#allocation6 + $0x178] sm:$0xff]  ;;  %388 = vmatpush.msrb.mxu2 %v331_v23  ;;  %v354_v52 = vld [vmem:[#allocation6 + $0x1b0] sm:$0xff]  ;;  %v305_v55 = vld [vmem:[#allocation6 + $0x28] sm:$0xff] }
  0x3a   :  { %369 = vmatpush.msrb.mxu1 %v314_v19  ;;  %408 = vmatpush.msrb.mxu3 %v347_v24  ;;  %v311_v31 = vld [vmem:[#allocation6 + $0x58] sm:$0xff]  ;;  %v322_v1 = vld [vmem:[#allocation6 + $0xb0] sm:$0xff]  ;;  %v337_v6 = vld [vmem:[#allocation6 + $0x128] sm:$0xff] }
  0x3b   :  { %275 = vmatpush.msrb.mxu0 %v189_v56  ;;  %389 = vmatpush.msrb.mxu2 %v330_v25  ;;  %v359_v32 = vld [vmem:[#allocation6 + $0x1d8] sm:$0xff]  ;;  %v353_v56 = vld [vmem:[#allocation6 + $0x1a8] sm:$0xff]  ;;  %v338_v2 = vld [vmem:[#allocation6 + $0x130] sm:$0xff] }
  0x3c   :  { %370 = vmatpush.msrb.mxu1 %v313_v21  ;;  %409 = vmatpush.msrb.mxu3 %v346_v28  ;;  %v327_v37 = vld [vmem:[#allocation6 + $0xd8] sm:$0xff]  ;;  %v350_v7 = vld [vmem:[#allocation6 + $0x190] sm:$0xff]  ;;  %v320_v9 = vld [vmem:[#allocation6 + $0xa0] sm:$0xff] }
  0x3d   :  { %276 = vmatpush.msrb.mxu0 %v185_v57  ;;  %390 = vmatpush.msrb.mxu2 %v329_v29  ;;  %v343_v38 = vld [vmem:[#allocation6 + $0x158] sm:$0xff]  ;;  %v304_v57 = vld [vmem:[#allocation6 + $0x20] sm:$0xff]  ;;  %v349_v11 = vld [vmem:[#allocation6 + $0x188] sm:$0xff] }
  0x3e   :  { %371 = vmatpush.msrb.mxu1 %v312_v26  ;;  %410 = vmatpush.msrb.mxu3 %v345_v30  ;;  %v307_v47 = vld [vmem:[#allocation6 + $0x38] sm:$0xff]  ;;  %v336_v10 = vld [vmem:[#allocation6 + $0x120] sm:$0xff]  ;;  %v334_v17 = vld [vmem:[#allocation6 + $0x110] sm:$0xff] }
  0x3f   :  { %277 = vmatpush.msrb.mxu0 %v181_v58  ;;  %391 = vmatpush.msrb.mxu2 %v328_v33  ;;  %v355_v48 = vld [vmem:[#allocation6 + $0x1b8] sm:$0xff]  ;;  %v352_v58 = vld [vmem:[#allocation6 + $0x1a0] sm:$0xff]  ;;  %v333_v19 = vld [vmem:[#allocation6 + $0x108] sm:$0xff] }
  0x40   :  { %372 = vmatpush.msrb.mxu1 %v311_v31  ;;  %411 = vmatpush.msrb.mxu3 %v344_v34  ;;  %v323_v53 = vld [vmem:[#allocation6 + $0xb8] sm:$0xff]  ;;  %v348_v15 = vld [vmem:[#allocation6 + $0x180] sm:$0xff]  ;;  %v479_v25 = vld [vmem:[#allocation7 + $0xe8] sm:$0xff] }
  0x41   :  { %278 = vmatpush.msrb.mxu0 %v177_v59  ;;  %392 = vmatpush.msrb.mxu2 %v327_v37  ;;  %v339_v54 = vld [vmem:[#allocation6 + $0x138] sm:$0xff]  ;;  %v550_v59 = vld [vmem:[%s751_s2] ss:$0 sm:$0xff]  ;;  %v476_v26 = vld [vmem:[#allocation7 + $0xd0] sm:$0xff] }
  0x42   :  { %373 = vmatpush.msrb.mxu1 %v310_v35  ;;  %412 = vmatpush.msrb.mxu3 %v343_v38  ;;  %v351_v3 = vld [vmem:[#allocation6 + $0x198] sm:$0xff]  ;;  %v332_v21 = vld [vmem:[#allocation6 + $0x100] sm:$0xff]  ;;  %v475_v29 = vld [vmem:[#allocation7 + $0xc8] sm:$0xff] }
  0x43   :  { %279 = vmatpush.msrb.mxu0 %v173_v60  ;;  %393 = vmatpush.msrb.mxu2 %v326_v41  ;;  %v319_v13 = vld [vmem:[#allocation6 + $0x98] sm:$0xff]  ;;  %v478_v24 = vld [vmem:[#allocation7 + $0xe0] sm:$0xff] }
  0x44   :  { %374 = vmatpush.msrb.mxu1 %v309_v39  ;;  %413 = vmatpush.msrb.mxu3 %v342_v42  ;;  %v335_v14 = vld [vmem:[#allocation6 + $0x118] sm:$0xff]  ;;  %v474_v28 = vld [vmem:[#allocation7 + $0xc0] sm:$0xff] }
  0x45   :  { %280 = vmatpush.msrb.mxu0 %v169_v61  ;;  %394 = vmatpush.msrb.mxu2 %v325_v45  ;;  %v481_v23 = vld [vmem:[#allocation7 + $0xf8] sm:$0xff]  ;;  %v202_v30 = vld [vmem:[%s753_s4] sm:$0xf] }
  0x46   :  { %375 = vmatpush.msrb.mxu1 %v308_v43  ;;  %414 = vmatpush.msrb.mxu3 %v341_v46  ;;  %v204_v31 = vperm.slane %v202_v30, 0  ;;  %v205_v38 = vperm.slane %v202_v30, 1 }
  0x47   :  { %281 = vmatpush.msrb.mxu0 %v165_v62  ;;  %395 = vmatpush.msrb.mxu2 %v324_v49 }
  0x48   :  { %376 = vmatpush.msrb.mxu1 %v307_v47  ;;  %415 = vmatpush.msrb.mxu3 %v340_v50 }
  0x49   :  { %282 = vmatpush.msrb.mxu0 %v161_v63  ;;  %396 = vmatpush.msrb.mxu2 %v323_v53  ;;  %v470_v53 = vld [vmem:[#allocation7 + $0xa0] sm:$0xff] }
  0x4a   :  { %377 = vmatpush.msrb.mxu1 %v306_v51  ;;  %416 = vmatpush.msrb.mxu3 %v339_v54  ;;  %v472_v51 = vld [vmem:[#allocation7 + $0xb0] sm:$0xff]  ;;  %v471_v54 = vld [vmem:[#allocation7 + $0xa8] sm:$0xff] }
  0x4b   :  { %283 = vmatpush.msrb.mxu0 %v157_v0  ;;  %v303_v0 = vld [vmem:[#allocation6 + $0x18] sm:$0xff]  ;;  %397 = vmatpush.msrb.mxu2 %v322_v1  ;;  %v458_v1 = vld [vmem:[#allocation7 + $0x40] sm:$0xff] }
  0x4c   :  { %378 = vmatpush.msrb.mxu1 %v305_v55  ;;  %417 = vmatpush.msrb.mxu3 %v338_v2  ;;  %v468_v55 = vld [vmem:[#allocation7 + $0x90] sm:$0xff]  ;;  %v459_v2 = vld [vmem:[#allocation7 + $0x48] sm:$0xff] }
  0x4d   :  { %284 = vmatpush.msrb.mxu0 %v153_v4  ;;  %v302_v4 = vld [vmem:[#allocation6 + $0x10] sm:$0xff]  ;;  %398 = vmatpush.msrb.mxu2 %v321_v5  ;;  %v454_v5 = vld [vmem:[#allocation7 + $0x20] sm:$0xff] }
  0x4e   :  { %379 = vmatpush.msrb.mxu1 %v304_v57  ;;  %418 = vmatpush.msrb.mxu3 %v337_v6  ;;  %v466_v57 = vld [vmem:[#allocation7 + $0x80] sm:$0xff]  ;;  %v455_v6 = vld [vmem:[#allocation7 + $0x28] sm:$0xff] }
  0x4f   :  { %285 = vmatpush.msrb.mxu0 %v149_v8  ;;  %v301_v8 = vld [vmem:[#allocation6 + $0x8] sm:$0xff]  ;;  %399 = vmatpush.msrb.mxu2 %v320_v9  ;;  %v450_v9 = vld [vmem:[#allocation7] sm:$0xff] }
  0x50   :  { %380 = vmatpush.msrb.mxu1 %v303_v0  ;;  %419 = vmatpush.msrb.mxu3 %v336_v10  ;;  %v461_v0 = vld [vmem:[#allocation7 + $0x58] sm:$0xff]  ;;  %v451_v10 = vld [vmem:[#allocation7 + $0x8] sm:$0xff] }
  0x51   :  { %286 = vmatpush.msrb.mxu0 %v145_v12  ;;  %v300_v12 = vld [vmem:[#allocation6] sm:$0xff]  ;;  %400 = vmatpush.msrb.mxu2 %v319_v13 }
  0x52   :  { %381 = vmatpush.msrb.mxu1 %v302_v4  ;;  %420 = vmatpush.msrb.mxu3 %v335_v14  ;;  %v457_v4 = vld [vmem:[#allocation7 + $0x38] sm:$0xff] }
  0x53   :  { %287 = vmatpush.msrb.mxu0 %v141_v16  ;;  %v318_v16 = vld [vmem:[#allocation6 + $0x90] sm:$0xff] }
  0x54   :  { %382 = vmatpush.msrb.mxu1 %v301_v8  ;;  %401 = vmatpush.msrb.mxu2 %v318_v16  ;;  %v453_v8 = vld [vmem:[#allocation7 + $0x18] sm:$0xff] }
  0x55   :  { %428 = vmatpush.msra.mxu0 %v363_v18  ;;  %421 = vmatpush.msrb.mxu3 %v334_v17  ;;  %v317_v18 = vld [vmem:[#allocation6 + $0x88] sm:$0xff] }
  0x56   :  { %383 = vmatpush.msrb.mxu1 %v300_v12  ;;  %402 = vmatpush.msrb.mxu2 %v317_v18 }
  0x57   :  { %429 = vmatpush.msra.mxu0 %v362_v20  ;;  %422 = vmatpush.msrb.mxu3 %v333_v19  ;;  %v316_v20 = vld [vmem:[#allocation6 + $0x80] sm:$0xff] }
  0x58   :  { %403 = vmatpush.msrb.mxu2 %v316_v20 }
  0x59   :  { %430 = vmatpush.msra.mxu0 %v361_v22  ;;  %423 = vmatpush.msrb.mxu3 %v332_v21  ;;  %v480_v22 = vld [vmem:[#allocation7 + $0xf0] sm:$0xff] }
  0x5b   :  { %431 = vmatpush.msra.mxu0 %v360_v27  ;;  %v477_v27 = vld [vmem:[#allocation7 + $0xd8] sm:$0xff] }
  0x5d   :  { %432 = vmatpush.msra.mxu0 %v359_v32  ;;  %v207_v32 = vperm.slane %v202_v30, 3 }
  0x5f   :  { %433 = vmatpush.msra.mxu0 %v358_v36 }
  0x61   :  { %434 = vmatpush.msra.mxu0 %v357_v40  ;;  %v206_v40 = vperm.slane %v202_v30, 2 }
  0x63   :  { %435 = vmatpush.msra.mxu0 %v356_v44 }
  0x65   :  { %436 = vmatpush.msra.mxu0 %v355_v48 }
  0x67   :  { %437 = vmatpush.msra.mxu0 %v354_v52  ;;  %v473_v52 = vld [vmem:[#allocation7 + $0xb8] sm:$0xff] }
  0x69   :  { %438 = vmatpush.msra.mxu0 %v353_v56  ;;  %v469_v56 = vld [vmem:[#allocation7 + $0x98] sm:$0xff] }
  0x6b   :  { %439 = vmatpush.msra.mxu0 %v352_v58  ;;  %v467_v58 = vld [vmem:[#allocation7 + $0x88] sm:$0xff] }
  0x6d   :  { %440 = vmatpush.msra.mxu0 %v351_v3  ;;  %v456_v3 = vld [vmem:[#allocation7 + $0x30] sm:$0xff] }
  0x6f   :  { %441 = vmatpush.msra.mxu0 %v350_v7  ;;  %v452_v7 = vld [vmem:[#allocation7 + $0x10] sm:$0xff] }
  0x71   :  { %442 = vmatpush.msra.mxu0 %v349_v11  ;;  %v551_v11 = vld [vmem:[%s755_s6] ss:$0 sm:$0xff] }
  0x73   :  { %443 = vmatpush.msra.mxu0 %v348_v15 }
  0xb1   :  { %v133_v60 = vpop.f32.mrf.mxu0 }
  0xb2   :  { %v134_v61 = vadd.f32 %v550_v59, %v133_v60  ;;  %v464_v59 = vld [vmem:[#allocation7 + $0x70] sm:$0xff]  ;;  %v465_v60 = vld [vmem:[#allocation7 + $0x78] sm:$0xff] }
  0xb4   :  { %v136_v62 = vmul.f32 0.1, %v134_v61 }
  0xb6   :  { %v137_v63 = vmax.f32 %v134_v61, %v136_v62  ;;  %v462_v61 = vld [vmem:[#allocation7 + $0x60] sm:$0xff]  ;;  %v463_v62 = vld [vmem:[#allocation7 + $0x68] sm:$0xff] }
  0xb8   :  { %228 = vmatmul.f32.vlgmr.msra.gmra.mxu1 %v137_v63  ;;  %248 = vmatmul.f32.vlgmr.msra.gmra.mxu2 %v137_v63 }
  0xb9   :  { %268 = vmatmul.f32.vlgmr.msra.gmra.mxu3 %v137_v63  ;;  %288 = vmatmul.f32.vlgmr.msrb.gmra.mxu0 %v137_v63  ;;  %v460_v63 = vld [vmem:[#allocation7 + $0x50] sm:$0xff] }
  0xba   :  { %488 = vmatpush.msra.mxu1 %v480_v22  ;;  %508 = vmatpush.msra.mxu2 %v481_v23  ;;  %v482_v22 = vld [vmem:[%s757_s8] sm:$0x3] }
  0xbb   :  { %v484_v23 = vperm.slane %v482_v22, 0 }
  0xbc   :  { %489 = vmatpush.msra.mxu1 %v478_v24  ;;  %509 = vmatpush.msra.mxu2 %v479_v25 }
  0xbe   :  { %490 = vmatpush.msra.mxu1 %v476_v26  ;;  %510 = vmatpush.msra.mxu2 %v477_v27  ;;  %v485_v26 = vperm.slane %v482_v22, 1 }
  0xc0   :  { %491 = vmatpush.msra.mxu1 %v474_v28  ;;  %511 = vmatpush.msra.mxu2 %v475_v29 }
  0xc2   :  { %492 = vmatpush.msra.mxu1 %v472_v51  ;;  %512 = vmatpush.msra.mxu2 %v473_v52 }
  0xc4   :  { %493 = vmatpush.msra.mxu1 %v470_v53  ;;  %513 = vmatpush.msra.mxu2 %v471_v54 }
  0xc6   :  { %494 = vmatpush.msra.mxu1 %v468_v55  ;;  %514 = vmatpush.msra.mxu2 %v469_v56 }
  0xc8   :  { %495 = vmatpush.msra.mxu1 %v466_v57  ;;  %515 = vmatpush.msra.mxu2 %v467_v58 }
  0xca   :  { %496 = vmatpush.msra.mxu1 %v464_v59  ;;  %516 = vmatpush.msra.mxu2 %v465_v60 }
  0xcc   :  { %497 = vmatpush.msra.mxu1 %v462_v61  ;;  %517 = vmatpush.msra.mxu2 %v463_v62 }
  0xce   :  { %498 = vmatpush.msra.mxu1 %v460_v63  ;;  %518 = vmatpush.msra.mxu2 %v461_v0 }
  0xd0   :  { %499 = vmatpush.msra.mxu1 %v458_v1  ;;  %519 = vmatpush.msra.mxu2 %v459_v2 }
  0xd2   :  { %500 = vmatpush.msra.mxu1 %v456_v3  ;;  %520 = vmatpush.msra.mxu2 %v457_v4 }
  0xd4   :  { %501 = vmatpush.msra.mxu1 %v454_v5  ;;  %521 = vmatpush.msra.mxu2 %v455_v6 }
  0xd6   :  { %502 = vmatpush.msra.mxu1 %v452_v7  ;;  %522 = vmatpush.msra.mxu2 %v453_v8 }
  0xd8   :  { %503 = vmatpush.msra.mxu1 %v450_v9  ;;  %523 = vmatpush.msra.mxu2 %v451_v10 }
 0x135   :  { %v229_v33 = vpop.f32.mrf.mxu1 }
 0x136   :  { %v230_v34 = vadd.f32 %v229_v33, %v204_v31  ;;  %v289_v35 = vpop.f32.mrf.mxu0 }
 0x137   :  { %v290_v36 = vadd.f32 %v289_v35, %v207_v32 }
 0x138   :  { %v292_v37 = vmul.f32 0.1, %v230_v34 }
 0x139   :  { %v295_v39 = vmul.f32 0.1, %v290_v36 }
 0x13a   :  { %v296_v41 = vmax.f32 %v230_v34, %v292_v37 }
 0x13b   :  { %v299_v42 = vmax.f32 %v290_v36, %v295_v39  ;;  %v249_v43 = vpop.f32.mrf.mxu2 }
 0x13c   :  { %v250_v44 = vadd.f32 %v249_v43, %v205_v38  ;;  %v269_v45 = vpop.f32.mrf.mxu3  ;;  %384 = vmatmul.f32.vlgmr.msrb.gmra.mxu1 %v296_v41 }
 0x13d   :  { %v270_v46 = vadd.f32 %v269_v45, %v206_v40  ;;  %444 = vmatmul.f32.vlgmr.msra.gmra.mxu0 %v299_v42 }
 0x13e   :  { %v293_v47 = vmul.f32 0.1, %v250_v44 }
 0x13f   :  { %v294_v48 = vmul.f32 0.1, %v270_v46 }
 0x140   :  { %v297_v49 = vmax.f32 %v250_v44, %v293_v47 }
 0x141   :  { %v298_v50 = vmax.f32 %v270_v46, %v294_v48 }
 0x142   :  { %404 = vmatmul.f32.vlgmr.msrb.gmra.mxu2 %v297_v49 }
 0x143   :  { %424 = vmatmul.f32.vlgmr.msrb.gmra.mxu3 %v298_v50 }
 0x1b9   :  { %v385_v12 = vpop.f32.mrf.mxu1 }
 0x1ba   :  { %v386_v13 = vadd.f32 %v551_v11, %v385_v12  ;;  %v445_v18 = vpop.f32.mrf.mxu0 }
 0x1c5   :  { %v405_v14 = vpop.f32.mrf.mxu2 }
 0x1c6   :  { %v406_v15 = vadd.f32 %v405_v14, %v386_v13  ;;  %v425_v16 = vpop.f32.mrf.mxu3 }
 0x1c8   :  { %v426_v17 = vadd.f32 %v425_v16, %v406_v15 }
 0x1ca   :  { %v446_v19 = vadd.f32 %v445_v18, %v426_v17 }
 0x1cc   :  { %v448_v20 = vmul.f32 0.1, %v446_v19 }
 0x1ce   :  { %v449_v21 = vmax.f32 %v446_v19, %v448_v20 }
 0x1d0   :  { %504 = vmatmul.f32.vlgmr.msra.gmra.mxu1 %v449_v21  ;;  %524 = vmatmul.f32.vlgmr.msra.gmra.mxu2 %v449_v21 }
 0x24d   :  { %v505_v24 = vpop.f32.mrf.mxu1 }
 0x24e   :  { %v506_v25 = vadd.f32 %v505_v24, %v484_v23 }
 0x250   :  { %552 = vtanh.f32 %v506_v25 }
 0x253   :  { %v525_v27 = vpop.f32.mrf.mxu2 }
 0x254   :  { %v526_v28 = vadd.f32 %v525_v27, %v485_v26 }
 0x256   :  { %v553_v29 = vpop.eup %552  ;;  %v530_v30 = vmax.f32 %v526_v28, -20.0 }
 0x257   :  { %529 = vst [vmem:[%s758_s9] sm:$0xff] %v553_v29 }
 0x258   :  { %v531_v31 = vmin.f32 %v530_v30, 2.0 }
 0x25a   :  { %532 = vst [vmem:[%s758_s9 + $0x8] sm:$0xff] %v531_v31 }
 0x25b   :  { %537 = vsyncpa [#allocation3], 1 }
 0x25c   :  { %538 = vsyncpa [#allocation5], 1 }
 0x25d   :  { %539 = vsyncpa [#allocation8], 1 }

</bundles_post_ra>
